<compile_context>
chip_gen: v6e
topology: v6e:2x2x1
jax: 0.10.0
libtpu: 0.0.40
codegen_flags: <defaults>
</compile_context>

<pallas_src>
import functools

import jax
import jax.numpy as jnp
from jax.experimental import pallas as pl
from jax.experimental.pallas import tpu as pltpu

LANES = 128
SUBLANES = 8
NONE_ROW_TILE_MAX = 4096          # 'none' path pipelines 3 slabs -> keep modest


# ----------------------------------------------------------------------------
# Per-chip configuration
# ----------------------------------------------------------------------------
@functools.lru_cache(maxsize=1)
def _chip_config():
    """(reduce_row_tile, num_slots) per TPU generation.

    Row tile sized so 2 double-buffered f32 input blocks fit the default
    scoped-VMEM budget (v5e 16 MiB, v6e/v7x 32 MiB).  num_slots is a leading
    'parallel' grid axis so v7x's two TensorCores each stream half the blocks.
    """
    try:
        kind = jax.devices()[0].device_kind.lower()
    except Exception:
        return 2048, 2
    if "v5 lite" in kind or "v5e" in kind:
        return 4096, 1            # 16 MiB scoped default, single TensorCore
    if "v6" in kind:
        return 8192, 1            # 32 MiB scoped default, single TensorCore
    if "v7" in kind or "7x" in kind:
        return 8192, 2            # two TensorCores share the reduction
    return 2048, 2                # v2/v3/v4/v5p/unknown: conservative tile


def _compiler_params(dim_sem, per_buffer_bytes):
    """CompilerParams; explicit VMEM budget only when blocks are large."""
    if 2 * per_buffer_bytes > (10 << 20):
        need = 2 * per_buffer_bytes + (8 << 20)
        vmem = int(min(max(need, 32 << 20), 48 << 20))
    else:
        vmem = None               # default scoped limit is plenty (and safe)
    return pltpu.CompilerParams(dimension_semantics=dim_sem,
                                vmem_limit_bytes=vmem)


# ----------------------------------------------------------------------------
# Elementwise focal pieces
# ----------------------------------------------------------------------------
def _modulating(omp, gamma):
    """(1-pt)**gamma with integer-gamma strength reduction (VPU, no EUP pow)."""
    g = float(gamma)
    if g == float(int(g)) and 1 <= int(g) <= 4:
        mod = omp
        for _ in range(int(g) - 1):
            mod = mod * omp
        return mod
    return omp ** g


def _focal_elems(p, t, alpha, gamma, binary_targets=False):
    """PyTorch F.binary_cross_entropy semantics (log clamp at -100)."""
    p = p.astype(jnp.float32)
    t = t.astype(jnp.float32)
    if binary_targets:
        # Exact only for t in {0,1}: one log, no exp (pt == prob of true class).
        q = t * p + (1.0 - t) * (1.0 - p)
        bce = -jnp.maximum(jnp.log(q), -100.0)
        pt = q
    else:
        log_p = jnp.maximum(jnp.log(p), -100.0)
        log_1mp = jnp.maximum(jnp.log(1.0 - p), -100.0)
        bce = -(t * log_p + (1.0 - t) * log_1mp)
        pt = None
    g = float(gamma)
    if g == 0.0:                  # plain (alpha-scaled) BCE: skip exp/pow
        return float(alpha) * bce
    if pt is None:
        pt = jnp.exp(-bce)
    # max(.,0) guards rounding-induced tiny negatives (intentional, benign
    # deviation from a bare (1-pt)**gamma which could NaN for fractional gamma).
    omp = jnp.maximum(1.0 - pt, 0.0)
    return (float(alpha) * _modulating(omp, g)) * bce


# ----------------------------------------------------------------------------
# Kernels
# ----------------------------------------------------------------------------
def _fused_reduce_kernel(pred_ref, tgt_ref, out_ref, acc_ref, *, params,
                         block_rows, steps_per_slot, num_blocks, valid_rows,
                         mask_tail, gate_phantom, binary_targets):
    """One HBM pass over (pred, target); per-(alpha,gamma) partial sums."""
    s = pl.program_id(0)
    j = pl.program_id(1)

    @pl.when(j == 0)
    def _init():
        acc_ref[...] = jnp.zeros_like(acc_ref)

    need_pt = any(float(g) != 0.0 for _, g in params)

    def _accumulate():
        p = pred_ref[...].astype(jnp.float32)
        t = tgt_ref[...].astype(jnp.float32)

        if mask_tail:
            # Partial last block: garbage rows beyond the slab are discarded
            # with a select (NOT a multiply) so input garbage / NaNs never
            # propagate into the sum.
            row0 = (s * steps_per_slot + j) * block_rows
            valid = (row0 + jax.lax.broadcasted_iota(jnp.int32, p.shape, 0)
                     ) < valid_rows
        else:
            valid = None

        if binary_targets:
            # t in {0,1}: one log, no exp -> cuts EUP work 3x on v7x.
            q = t * p + (1.0 - t) * (1.0 - p)
            if valid is not None:
                q = jnp.where(valid, q, 1.0)        # -> bce 0, focal 0
            bce = -jnp.maximum(jnp.log(q), -100.0)
            pt = q
        else:
            log_p = jnp.maximum(jnp.log(p), -100.0)
            log_1mp = jnp.maximum(jnp.log(1.0 - p), -100.0)
            bce = -(t * log_p + (1.0 - t) * log_1mp)
            if valid is not None:
                bce = jnp.where(valid, bce, 0.0)    # -> pt 1, focal 0
            pt = jnp.exp(-bce) if need_pt else None

        omp = jnp.maximum(1.0 - pt, 0.0) if need_pt else None

        for idx, (alpha, gamma) in enumerate(params):
            a, g = float(alpha), float(gamma)
            if g == 0.0:
                focal = a * bce
            else:
                focal = (a * _modulating(omp, g)) * bce
            # (rows/8, 8, 128).sum(axis=0): pure VPU vreg adds (no per-step
            # cross-sublane XLU reduce); lane/sublane-parallel accumulator.
            acc_ref[idx] += focal.reshape(
                block_rows // SUBLANES, SUBLANES, LANES).sum(axis=0)

    if gate_phantom:
        # Slot-rounding phantom steps (block index >= num_blocks) skip ALL
        # work at runtime (the clamped DMA still lands, its data is ignored).
        @pl.when(s * steps_per_slot + j < num_blocks)
        def _():
            _accumulate()
    else:
        _accumulate()

    @pl.when(j == pl.num_programs(1) - 1)
    def _finalize():
        out_ref[...] = acc_ref[...][None]           # (1, L, 8, 128), once/slot


def _focal_elemwise_kernel(pred_ref, tgt_ref, out_ref, *, alpha, gamma,
                           binary_targets):
    out_ref[...] = _focal_elems(pred_ref[...], tgt_ref[...], alpha, gamma,
                                binary_targets).astype(out_ref.dtype)


# ----------------------------------------------------------------------------
# Wrappers
# ----------------------------------------------------------------------------
def _as_lane_slab(x, row_tile):
    """View x as a lane-dense (rows, 128) slab; pad only when strictly needed.

    Pads to a lane multiple only when numel % 128 != 0, and to a sublane
    multiple only for small single-block inputs.  Pad value 1 gives
    pred = target = 1 -> bce = 0 -> focal = 0, so padding never changes a sum.
    Big multi-block tails are masked in-kernel instead of padded (avoids a
    full-tensor HBM copy).
    """
    flat = x.reshape(-1)
    lane_pad = (-flat.size) % LANES
    if lane_pad:
        flat = jnp.pad(flat, (0, lane_pad), constant_values=1)
    rows = flat.size // LANES
    if rows <= row_tile:
        row_pad = (-rows) % SUBLANES
        if row_pad:
            flat = jnp.pad(flat, (0, row_pad * LANES), constant_values=1)
            rows += row_pad
    return flat.reshape(rows, LANES)


def multi_focal_sums(pred, target, params, binary_targets=False,
                     row_tile=None, num_slots=None):
    """Fused single-pass kernel: per-(alpha, gamma) focal SUMS, shape (L,)."""
    assert pred.shape == target.shape
    chip_tile, chip_slots = _chip_config()
    row_tile = int(row_tile) if row_tile is not None else chip_tile
    row_tile = max(SUBLANES, (row_tile // SUBLANES) * SUBLANES)
    num_slots = max(1, int(num_slots) if num_slots is not None else chip_slots)

    pred2d = _as_lane_slab(pred, row_tile)
    tgt2d = _as_lane_slab(target, row_tile)
    rows = pred2d.shape[0]

    block_rows = row_tile if rows > row_tile else rows      # always % 8 == 0
    num_blocks = pl.cdiv(rows, block_rows)
    num_slots = min(num_slots, num_blocks)
    steps_per_slot = pl.cdiv(num_blocks, num_slots)
    gate_phantom = num_slots * steps_per_slot != num_blocks
    mask_tail = num_blocks * block_rows != rows
    num_losses = len(params)

    def in_map(s, j):
        return (jnp.minimum(s * steps_per_slot + j, num_blocks - 1), 0)

    kernel = functools.partial(
        _fused_reduce_kernel,
        params=tuple((float(a), float(g)) for a, g in params),
        block_rows=block_rows, steps_per_slot=steps_per_slot,
        num_blocks=num_blocks, valid_rows=rows,
        mask_tail=mask_tail, gate_phantom=gate_phantom,
        binary_targets=bool(binary_targets))

    n_proc = rows * LANES
    per_buffer_bytes = block_rows * LANES * (pred2d.dtype.itemsize
                                             + tgt2d.dtype.itemsize)
    cost = pl.CostEstimate(
        flops=int((8 + 5 * num_losses) * n_proc),
        transcendentals=int((1 if binary_targets else 3) * n_proc),
        bytes_accessed=int(pred2d.size * pred2d.dtype.itemsize
                           + tgt2d.size * tgt2d.dtype.itemsize
                           + num_slots * num_losses * SUBLANES * LANES * 4))

    partials = pl.pallas_call(
        kernel,
        out_shape=jax.ShapeDtypeStruct(
            (num_slots, num_losses, SUBLANES, LANES), jnp.float32),
        grid_spec=pltpu.PrefetchScalarGridSpec(
            num_scalar_prefetch=0,
            grid=(num_slots, steps_per_slot),
            in_specs=[pl.BlockSpec((block_rows, LANES), in_map),
                      pl.BlockSpec((block_rows, LANES), in_map)],
            out_specs=pl.BlockSpec((1, num_losses, SUBLANES, LANES),
                                   lambda s, j: (s, 0, 0, 0)),
            scratch_shapes=[pltpu.VMEM((num_losses, SUBLANES, LANES),
                                       jnp.float32)]),
        compiler_params=_compiler_params(("parallel", "arbitrary"),
                                         per_buffer_bytes),
        cost_estimate=cost,
    )(pred2d, tgt2d)

    return jnp.sum(partials, axis=(0, 2, 3))                 # (num_losses,)


def focal_loss(pred, target, alpha=1.0, gamma=2.0, reduction="mean",
               binary_targets=False):
    assert pred.shape == target.shape
    if reduction in ("mean", "sum"):
        total = multi_focal_sums(pred, target, ((alpha, gamma),),
                                 binary_targets=binary_targets)[0]
        if reduction == "mean":
            total = total / jnp.float32(pred.size)
        return total

    # reduction == "none": elementwise kernel, result in the input dtype.
    orig_shape = pred.shape
    n = pred.size
    chip_tile, _ = _chip_config()
    row_tile = min(chip_tile, NONE_ROW_TILE_MAX)
    pred2d = _as_lane_slab(pred, row_tile)
    tgt2d = _as_lane_slab(target, row_tile)
    rows = pred2d.shape[0]
    block_rows = row_tile if rows > row_tile else rows
    num_blocks = pl.cdiv(rows, block_rows)

    kernel = functools.partial(_focal_elemwise_kernel, alpha=alpha,
                               gamma=gamma, binary_targets=bool(binary_targets))
    per_buffer_bytes = block_rows * LANES * (pred2d.dtype.itemsize
                                             + tgt2d.dtype.itemsize
                                             + pred.dtype.itemsize)
    n_proc = rows * LANES
    cost = pl.CostEstimate(
        flops=int(14 * n_proc),
        transcendentals=int((1 if binary_targets else 3) * n_proc),
        bytes_accessed=int(n_proc * (pred2d.dtype.itemsize
                                     + tgt2d.dtype.itemsize
                                     + pred.dtype.itemsize)))

    out = pl.pallas_call(
        kernel,
        out_shape=jax.ShapeDtypeStruct((rows, LANES), pred.dtype),
        grid_spec=pltpu.PrefetchScalarGridSpec(
            num_scalar_prefetch=0,
            grid=(num_blocks,),
            in_specs=[pl.BlockSpec((block_rows, LANES), lambda i: (i, 0)),
                      pl.BlockSpec((block_rows, LANES), lambda i: (i, 0))],
            out_specs=pl.BlockSpec((block_rows, LANES), lambda i: (i, 0))),
        compiler_params=_compiler_params(("parallel",), per_buffer_bytes),
        cost_estimate=cost,
    )(pred2d, tgt2d)

    out_flat = out.reshape(-1)
    if out_flat.size != n:
        out_flat = out_flat[:n]
    return out_flat.reshape(orig_shape)


# ----------------------------------------------------------------------------
# Constituent losses + AdaptiveWeightedLoss (forward semantics of the module)
# ----------------------------------------------------------------------------
class FocalLoss:
    """Binary focal loss, Pallas-backed."""

    def __init__(self, alpha=1.0, gamma=2.0, reduction="mean",
                 binary_targets=False):
        self.alpha, self.gamma, self.reduction = alpha, gamma, reduction
        self.binary_targets = binary_targets

    def __call__(self, pred, target):
        return focal_loss(pred, target, self.alpha, self.gamma,
                          self.reduction, self.binary_targets)


class BCELoss(FocalLoss):
    """Mean binary cross-entropy == focal loss with alpha=1, gamma=0."""

    def __init__(self, binary_targets=False):
        super().__init__(alpha=1.0, gamma=0.0, reduction="mean",
                         binary_targets=binary_targets)


class AdaptiveWeightedLoss:
    """JAX/Pallas port of AdaptiveWeightedLoss.forward.

    When every constituent loss is a mean-reduced FocalLoss/BCELoss, they are
    fused into ONE Pallas pass over (pred, target) — one HBM read instead of
    one per loss — and the history bookkeeping does a single batched host
    sync after all device work has been issued (no per-loss .item() stall).
    """

    def __init__(self, losses, initial_weights, adaptation_rate=0.1,
                 min_weight=0.1, max_weight=2.0):
        self.losses = dict(losses)
        self.weights = {name: jnp.float32(w)
                        for name, w in initial_weights.items()}
        self.adaptation_rate = adaptation_rate
        self.min_weight = min_weight
        self.max_weight = max_weight
        self.loss_history = {name: [] for name in losses}
        self.training = True

    def _fusable(self, names):
        fns = [self.losses[n] for n in names]
        return (len(fns) > 0
                and all(isinstance(f, FocalLoss) and f.reduction == "mean"
                        for f in fns)
                and len({bool(f.binary_targets) for f in fns}) == 1)

    def __call__(self, pred, target):
        names = list(self.losses.keys())
        if self._fusable(names):
            params = tuple((self.losses[n].alpha, self.losses[n].gamma)
                           for n in names)
            sums = multi_focal_sums(
                pred, target, params,
                binary_targets=self.losses[names[0]].binary_targets)
            inv_n = jnp.float32(1.0 / pred.size)
            loss_values = {n: sums[i] * inv_n for i, n in enumerate(names)}
        else:
            loss_values = {n: self.losses[n](pred, target) for n in names}

        loss_dict = {}
        total_loss = jnp.float32(0.0)
        for name in names:
            loss_value = loss_values[name]
            weight = jnp.clip(self.weights[name], self.min_weight,
                              self.max_weight)
            weighted_loss = weight * loss_value
            loss_dict[name] = loss_value
            loss_dict[f"weighted_{name}"] = weighted_loss
            loss_dict[f"weight_{name}"] = weight
            total_loss = total_loss + weighted_loss
        loss_dict["total"] = total_loss

        # Single batched host sync (PyTorch does .item() per loss).
        # TODO(synk): the history list is host-side Python state, so this
        # forward cannot be wrapped in jax.jit end-to-end; keep it outside jit.
        host_vals = jax.device_get([loss_values[n] for n in names])
        for name, v in zip(names, host_vals):
            self.loss_history[name].append(float(v))
            if len(self.loss_history[name]) > 100:
                self.loss_history[name].pop(0)
        return loss_dict

    def adapt_weights(self):
        """Host-side stateful weight adaptation (no kernel work)."""
        if not self.training:
            return
        for name in self.losses:
            hist = self.loss_history[name]
            if len(hist) >= 10:
                recent = hist[-10:]
                trend = sum(recent[-5:]) / 5.0 - sum(recent[:5]) / 5.0
                w = float(self.weights[name])
                if trend > 0:
                    w += self.adaptation_rate
                elif trend < -0.01:
                    w -= self.adaptation_rate * 0.5
                self.weights[name] = jnp.float32(
                    min(max(w, self.min_weight), self.max_weight))


# ----------------------------------------------------------------------------
# Pure-JAX reference (mirrors PyTorch semantics) + tests
# ----------------------------------------------------------------------------
def _reference_focal(pred, target, alpha=1.0, gamma=2.0, reduction="mean"):
    p = pred.astype(jnp.float32)
    t = target.astype(jnp.float32)
    bce = -(t * jnp.maximum(jnp.log(p), -100.0)
            + (1.0 - t) * jnp.maximum(jnp.log(1.0 - p), -100.0))
    pt = jnp.exp(-bce)
    focal = alpha * (1.0 - pt) ** gamma * bce
    if reduction == "mean":
        return focal.mean()
    if reduction == "sum":
        return focal.sum()
    return focal


if __name__ == "__main__":
    key = jax.random.PRNGKey(0)
    kp, kt = jax.random.split(key)
    B, C, H, W = 2, 4, 16, 16      # NCHW, matching PyTorch convention
    pred = jax.nn.sigmoid(jax.random.normal(kp, (B, C, H, W), jnp.float32))
    target = (jax.random.uniform(kt, (B, C, H, W)) > 0.5).astype(jnp.float32)

    # 1) Single focal-loss kernel: mean / sum / none.
    out_mean = jax.block_until_ready(focal_loss(pred, target, 1.0, 2.0, "mean"))
    ref_mean = _reference_focal(pred, target, 1.0, 2.0, "mean")
    assert jnp.allclose(out_mean, ref_mean, rtol=1e-5, atol=1e-6), (out_mean, ref_mean)

    out_sum = jax.block_until_ready(focal_loss(pred, target, reduction="sum"))
    ref_sum = _reference_focal(pred, target, reduction="sum")
    assert jnp.allclose(out_sum, ref_sum, rtol=1e-4, atol=1e-2), (out_sum, ref_sum)

    out_none = jax.block_until_ready(focal_loss(pred, target, reduction="none"))
    ref_none = _reference_focal(pred, target, reduction="none")
    assert out_none.shape == (B, C, H, W)
    assert jnp.allclose(out_none, ref_none, rtol=1e-5, atol=1e-6)

    # 2) Ragged shape (exercises the minimal lane/sublane pad path).
    pred_r = jax.nn.sigmoid(jax.random.normal(kp, (2, 3, 7, 5), jnp.float32))
    tgt_r = (jax.random.uniform(kt, (2, 3, 7, 5)) > 0.5).astype(jnp.float32)
    out_r = jax.block_until_ready(focal_loss(pred_r, tgt_r, reduction="mean"))
    ref_r = _reference_focal(pred_r, tgt_r, reduction="mean")
    assert jnp.allclose(out_r, ref_r, rtol=1e-5, atol=1e-6), (out_r, ref_r)

    # 3) Fused multi-loss kernel with forced tiny tiles: multi-block grid,
    #    two reduction slots, a phantom step and a masked ragged tail.
    n_elems = 5 * 8 * LANES - 200
    kp2, kt2 = jax.random.split(jax.random.PRNGKey(1))
    pred_m = jax.nn.sigmoid(jax.random.normal(kp2, (n_elems,), jnp.float32))
    tgt_m = (jax.random.uniform(kt2, (n_elems,)) > 0.5).astype(jnp.float32)
    sums = jax.block_until_ready(
        multi_focal_sums(pred_m, tgt_m, ((1.0, 2.0), (1.0, 0.0)),
                         row_tile=8, num_slots=2))
    ref_f = _reference_focal(pred_m, tgt_m, 1.0, 2.0, "sum")
    ref_b = _reference_focal(pred_m, tgt_m, 1.0, 0.0, "sum")
    assert jnp.allclose(sums[0], ref_f, rtol=1e-4, atol=1e-2), (sums[0], ref_f)
    assert jnp.allclose(sums[1], ref_b, rtol=1e-4, atol=1e-2), (sums[1], ref_b)

    # 4) Binary-target EUP fast path (targets here really are {0,1}).
    out_bin = jax.block_until_ready(
        focal_loss(pred, target, 1.0, 2.0, "mean", binary_targets=True))
    assert jnp.allclose(out_bin, ref_mean, rtol=1e-4, atol=1e-5), (out_bin, ref_mean)

    # 5) AdaptiveWeightedLoss.forward: ONE fused pallas_call for both losses.
    awl = AdaptiveWeightedLoss(
        losses={"focal": FocalLoss(alpha=1.0, gamma=2.0), "bce": BCELoss()},
        initial_weights={"focal": 1.0, "bce": 0.5})
    loss_dict = awl(pred, target)
    total = jax.block_until_ready(loss_dict["total"])

    ref_bce = _reference_focal(pred, target, 1.0, 0.0, "mean")
    ref_total = (jnp.clip(jnp.float32(1.0), 0.1, 2.0) * ref_mean
                 + jnp.clip(jnp.float32(0.5), 0.1, 2.0) * ref_bce)
    assert jnp.allclose(total, ref_total, rtol=1e-5, atol=1e-6), (total, ref_total)
    assert set(loss_dict) == {"focal", "weighted_focal", "weight_focal",
                              "bce", "weighted_bce", "weight_bce", "total"}
    assert len(awl.loss_history["focal"]) == 1
    assert len(awl.loss_history["bce"]) == 1

    print("KERNEL_OK")
</pallas_src>

<mosaic_0001>
module attributes {stable_mosaic.version = 11 : i64} {
  func.func @_fused_reduce_kernel(%arg0: i32, %arg1: i32, %arg2: memref<16x128xf32, #tpu.memory_space<vmem>>, %arg3: memref<16x128xf32, #tpu.memory_space<vmem>>, %arg4: memref<1x1x8x128xf32, #tpu.memory_space<vmem>>, %arg5: memref<1x8x128xf32, #tpu.memory_space<vmem>>) attributes {dimension_semantics = [#tpu.dimension_semantics<parallel>, #tpu.dimension_semantics<arbitrary>], iteration_bounds = array<i64: 1, 1>, scalar_prefetch = 0 : i64, scratch_operands = 1 : i64, tpu.core_type = #tpu.core_type<tc>, window_params = [{transform_indices = @transform_0, window_bounds = array<i64: 16, 128>}, {transform_indices = @transform_1, window_bounds = array<i64: 16, 128>}, {transform_indices = @transform_2, window_bounds = array<i64: 1, 1, 8, 128>}]} {
    %c0_i32 = arith.constant 0 : i32
    %0 = arith.cmpi eq, %arg1, %c0_i32 : i32
    %1 = arith.extui %0 : i1 to i32
    %c0_i32_0 = arith.constant 0 : i32
    %2 = arith.cmpi ne, %1, %c0_i32_0 : i32
    scf.if %2 {
      %cst_21 = arith.constant 0.000000e+00 : f32
      %42 = vector.broadcast %cst_21 : f32 to vector<1x8x128xf32>
      %c0_22 = arith.constant 0 : index
      %c0_23 = arith.constant 0 : index
      %c0_24 = arith.constant 0 : index
      %43 = vector.load %arg5[%c0_22, %c0_23, %c0_24] : memref<1x8x128xf32, #tpu.memory_space<vmem>>, vector<1x8x128xf32>
      tpu.vector_store %arg5[%c0_22, %c0_23, %c0_24], %42 {strides = array<i32>} : memref<1x8x128xf32, #tpu.memory_space<vmem>>, vector<1x8x128xf32>,
    } else {
    }
    %c0 = arith.constant 0 : index
    %c0_1 = arith.constant 0 : index
    %3 = vector.load %arg2[%c0, %c0_1] : memref<16x128xf32, #tpu.memory_space<vmem>>, vector<16x128xf32>
    %c0_2 = arith.constant 0 : index
    %c0_3 = arith.constant 0 : index
    %4 = vector.load %arg3[%c0_2, %c0_3] : memref<16x128xf32, #tpu.memory_space<vmem>>, vector<16x128xf32>
    %5 = math.log %3 : vector<16x128xf32>
    %cst = arith.constant -1.000000e+02 : f32
    %6 = vector.broadcast %cst : f32 to vector<16x128xf32>
    %7 = arith.maximumf %5, %6 : vector<16x128xf32>
    %cst_4 = arith.constant 1.000000e+00 : f32
    %8 = vector.broadcast %cst_4 : f32 to vector<16x128xf32>
    %9 = arith.subf %8, %3 : vector<16x128xf32>
    %10 = math.log %9 : vector<16x128xf32>
    %cst_5 = arith.constant -1.000000e+02 : f32
    %11 = vector.broadcast %cst_5 : f32 to vector<16x128xf32>
    %12 = arith.maximumf %10, %11 : vector<16x128xf32>
    %13 = arith.mulf %4, %7 : vector<16x128xf32>
    %cst_6 = arith.constant 1.000000e+00 : f32
    %14 = vector.broadcast %cst_6 : f32 to vector<16x128xf32>
    %15 = arith.subf %14, %4 : vector<16x128xf32>
    %16 = arith.mulf %15, %12 : vector<16x128xf32>
    %17 = arith.addf %13, %16 : vector<16x128xf32>
    %cst_7 = arith.constant 0.000000e+00 : f32
    %18 = vector.broadcast %cst_7 : f32 to vector<16x128xf32>
    %19 = arith.subf %18, %17 : vector<16x128xf32>
    %cst_8 = arith.constant 0.000000e+00 : f32
    %20 = vector.broadcast %cst_8 : f32 to vector<16x128xf32>
    %21 = arith.subf %20, %19 : vector<16x128xf32>
    %22 = math.exp %21 : vector<16x128xf32>
    %cst_9 = arith.constant 1.000000e+00 : f32
    %23 = vector.broadcast %cst_9 : f32 to vector<16x128xf32>
    %24 = arith.subf %23, %22 : vector<16x128xf32>
    %cst_10 = arith.constant 0.000000e+00 : f32
    %25 = vector.broadcast %cst_10 : f32 to vector<16x128xf32>
    %26 = arith.maximumf %24, %25 : vector<16x128xf32>
    %27 = arith.mulf %26, %26 : vector<16x128xf32>
    %cst_11 = arith.constant 1.000000e+00 : f32
    %28 = vector.broadcast %cst_11 : f32 to vector<16x128xf32>
    %29 = arith.mulf %28, %27 : vector<16x128xf32>
    %30 = arith.mulf %29, %19 : vector<16x128xf32>
    %c0_12 = arith.constant 0 : index
    %c0_13 = arith.constant 0 : index
    %c0_14 = arith.constant 0 : index
    %31 = vector.load %arg5[%c0_12, %c0_13, %c0_14] : memref<1x8x128xf32, #tpu.memory_space<vmem>>, vector<1x8x128xf32>
    %32 = vector.shape_cast %31 : vector<1x8x128xf32> to vector<8x128xf32>
    %33 = vector.shape_cast %30 : vector<16x128xf32> to vector<2x8x128xf32>
    %cst_15 = arith.constant dense<0.000000e+00> : vector<8x128xf32>
    %34 = vector.multi_reduction <add>, %33, %cst_15 [0] : vector<2x8x128xf32> to vector<8x128xf32>
    %35 = arith.addf %32, %34 : vector<8x128xf32>
    %c0_16 = arith.constant 0 : index
    %c0_17 = arith.constant 0 : index
    %c0_18 = arith.constant 0 : index
    %36 = vector.load %arg5[%c0_16, %c0_17, %c0_18] : memref<1x8x128xf32, #tpu.memory_space<vmem>>, vector<1x8x128xf32>
    %37 = vector.shape_cast %36 : vector<1x8x128xf32> to vector<8x128xf32>
    %38 = vector.shape_cast %35 : vector<8x128xf32> to vector<1x8x128xf32>
    tpu.vector_store %arg5[%c0_16, %c0_17, %c0_18], %38 {strides = array<i32>} : memref<1x8x128xf32, #tpu.memory_space<vmem>>, vector<1x8x128xf32>,
    %c0_i32_19 = arith.constant 0 : i32
    %39 = arith.cmpi eq, %arg1, %c0_i32_19 : i32
    %40 = arith.extui %39 : i1 to i32
    %c0_i32_20 = arith.constant 0 : i32
    %41 = arith.cmpi ne, %40, %c0_i32_20 : i32
    scf.if %41 {
      %c0_21 = arith.constant 0 : index
      %c0_22 = arith.constant 0 : index
      %c0_23 = arith.constant 0 : index
      %42 = vector.load %arg5[%c0_21, %c0_22, %c0_23] : memref<1x8x128xf32, #tpu.memory_space<vmem>>, vector<1x8x128xf32>
      %43 = vector.shape_cast %42 : vector<1x8x128xf32> to vector<1x1x8x128xf32>
      %c0_24 = arith.constant 0 : index
      %c0_25 = arith.constant 0 : index
      %c0_26 = arith.constant 0 : index
      %c0_27 = arith.constant 0 : index
      %44 = vector.load %arg4[%c0_24, %c0_25, %c0_26, %c0_27] : memref<1x1x8x128xf32, #tpu.memory_space<vmem>>, vector<1x1x8x128xf32>
      tpu.vector_store %arg4[%c0_24, %c0_25, %c0_26, %c0_27], %43 {strides = array<i32>} : memref<1x1x8x128xf32, #tpu.memory_space<vmem>>, vector<1x1x8x128xf32>,
    } else {
    }
    return
  }
  func.func @transform_0(%arg0: i32, %arg1: i32) -> (i32, i32) {
    %c1_i32 = arith.constant 1 : i32
    %0 = arith.muli %arg0, %c1_i32 : i32
    %1 = arith.addi %0, %arg1 : i32
    %c0_i32 = arith.constant 0 : i32
    %2 = arith.minsi %1, %c0_i32 : i32
    %c0_i32_0 = arith.constant 0 : i32
    %c0_i32_1 = arith.constant 0 : i32
    return %2, %c0_i32_0 : i32, i32
  }
  func.func @transform_1(%arg0: i32, %arg1: i32) -> (i32, i32) {
    %c1_i32 = arith.constant 1 : i32
    %0 = arith.muli %arg0, %c1_i32 : i32
    %1 = arith.addi %0, %arg1 : i32
    %c0_i32 = arith.constant 0 : i32
    %2 = arith.minsi %1, %c0_i32 : i32
    %c0_i32_0 = arith.constant 0 : i32
    %c0_i32_1 = arith.constant 0 : i32
    return %2, %c0_i32_0 : i32, i32
  }
  func.func @transform_2(%arg0: i32, %arg1: i32) -> (i32, i32, i32, i32) {
    %c0_i32 = arith.constant 0 : i32
    %c0_i32_0 = arith.constant 0 : i32
    %c0_i32_1 = arith.constant 0 : i32
    %c0_i32_2 = arith.constant 0 : i32
    return %arg0, %c0_i32, %c0_i32_0, %c0_i32_1 : i32, i32, i32, i32
  }
}

</mosaic_0001>

<bundles_post_ra>
// kernel: tpu_custom_call.1
= control target key start
LH: loop header
LB: loop body
LE: loop exit
PB: predicated region body
PF: predicated region fallthrough
CT: control target
= control target key end

     0   :  { %7 = vsyncpa [#allocation4], 0  ;;  %s248_s0 = inlined_call_operand.hbm [shape: f32[16,128], index: 0, kind: input, shape index: {}]   ;;  %s249_s1 = inlined_call_operand.hbm [shape: f32[16,128], index: 1, kind: input, shape index: {}]   ;;  %s250_s2 = inlined_call_operand.hbm [shape: f32[1,1,8,128], index: 2, kind: output, shape index: {}]  }
   0x1   :  { %8 = vsyncpa [#allocation7], 0 }
   0x2   :  { %9 = vsyncpa [#allocation5], 0  ;;  %s219_s9 = smov [#allocation3]  }
   0x3   :  { %s21_s10 = sshll.u32 %s219_s9, 4  ;;  %s22_s10 = int_to_ptr.vmem [resolvable:$true] %s21_s10 }
   0x4   :  { %s161_s11 = scalar_lea.vmem %s22_s10, 256  ;;  %p166_p1 = scmp.lt.s32.totalorder %s22_s10, %s22_s10 }
   0x5   :  { %p162_p0 = scmp.ne.s32.totalorder %s22_s10, %s161_s11  ;;  %p167_p2 = scmp.lt.s32.totalorder %s161_s11, %s161_s11 }
   0x7   :  { %p168_p3 = por %p167_p2, %p166_p1 }
   0x9   :  { %p169_p4 = pnand %p168_p3, %p162_p0 }
   0xb   :  { %172 = shalt.err (!%p169_p4)
}
   0xc   :  { %s220_s12 = smov 128   ;;  %s221_s13 = smov 8  }
   0xd   :  { %27 = dma.hbm_to_vmem [thread:$0]  %s248_s0, 256, %s22_s10, [#allocation4], %s220_s12, %s220_s12, %s221_s13  }
   0xe   :  { %s222_s16 = smov [#allocation6]  }
   0xf   :  { %s39_s17 = sshll.u32 %s222_s16, 4  ;;  %s40_s17 = int_to_ptr.vmem [resolvable:$true] %s39_s17 }
  0x10   :  { %s181_s18 = scalar_lea.vmem %s40_s17, 256  ;;  %p186_p6 = scmp.lt.s32.totalorder %s40_s17, %s40_s17 }
  0x11   :  { %p182_p5 = scmp.ne.s32.totalorder %s40_s17, %s181_s18  ;;  %p187_p7 = scmp.lt.s32.totalorder %s181_s18, %s181_s18 }
  0x13   :  { %p188_p8 = por %p187_p7, %p186_p6 }
  0x15   :  { %p189_p9 = pnand %p188_p8, %p182_p5 }
  0x17   :  { %192 = shalt.err (!%p189_p9)
}
  0x18   :  { %45 = dma.hbm_to_vmem [thread:$0]  %s249_s1, 256, %s40_s17, [#allocation7], %s220_s12, %s220_s12, %s221_s13  }
  0x19   :  { %213 = dma.done.wait [#allocation4], 256  }
  0x1a   :  { %214 = vsyncadd [#allocation4], 4294967040 }
  0x1b   :  { %215 = dma.done.wait [#allocation7], 256  }
  0x1c   :  { %216 = vsyncadd [#allocation7], 4294967040  ;;  %v65_v0 = vld [vmem:[#allocation3] sm:$0xff]  ;;  %v66_v1 = vld [vmem:[#allocation3 + $0x8] sm:$0xff]  ;;  %s223_s0 = smov [#allocation8]  }
  0x1d   :  { %141 = vlog2.f32 %v65_v0  ;;  %v75_v2 = vsub.f32 1.0, %v65_v0  ;;  %v76_v3 = vsub.f32 1.0, %v66_v1  ;;  %v67_v5 = vld [vmem:[#allocation6] sm:$0xff]  ;;  %v68_v7 = vld [vmem:[#allocation6 + $0x8] sm:$0xff]  ;;  %s122_s1 = sshll.u32 %s223_s0, 4  ;;  %s123_s1 = int_to_ptr.vmem [resolvable:$true] %s122_s1 }
  0x1e   :  { %143 = vlog2.f32 %v66_v1  ;;  %v85_v14 = vsub.f32 1.0, %v67_v5  ;;  %v86_v17 = vsub.f32 1.0, %v68_v7  ;;  %s193_s21 = scalar_lea.vmem %s123_s1, 128  ;;  %p198_p11 = scmp.lt.s32.totalorder %s123_s1, %s123_s1 }
  0x1f   :  { %145 = vlog2.f32 %v75_v2  ;;  %p194_p10 = scmp.ne.s32.totalorder %s123_s1, %s193_s21  ;;  %p199_p12 = scmp.lt.s32.totalorder %s193_s21, %s193_s21 }
  0x20   :  { %147 = vlog2.f32 %v76_v3 }
  0x21   :  { %p200_p13 = por %p199_p12, %p198_p11 }
  0x23   :  { %p201_p0 = pnand %p200_p13, %p194_p10 }
  0x2a   :  { %v142_v4 = vpop.eup %141 }
  0x2b   :  { %v144_v6 = vpop.eup %143  ;;  %v70_v8 = vmul.f32 0.6931472, %v142_v4 }
  0x2c   :  { %v146_v9 = vpop.eup %145  ;;  %v72_v10 = vmul.f32 0.6931472, %v144_v6 }
  0x2d   :  { %v148_v11 = vpop.eup %147  ;;  %v73_v12 = vmax.f32 %v70_v8, -100.0  ;;  %v78_v13 = vmul.f32 0.6931472, %v146_v9 }
  0x2e   :  { %v74_v15 = vmax.f32 %v72_v10, -100.0  ;;  %v80_v16 = vmul.f32 0.6931472, %v148_v11 }
  0x2f   :  { %v81_v18 = vmax.f32 %v78_v13, -100.0  ;;  %v83_v19 = vmul.f32 %v73_v12, %v67_v5 }
  0x30   :  { %v82_v20 = vmax.f32 %v80_v16, -100.0  ;;  %v84_v21 = vmul.f32 %v74_v15, %v68_v7 }
  0x31   :  { %v87_v22 = vmul.f32 %v85_v14, %v81_v18 }
  0x32   :  { %v88_v23 = vmul.f32 %v86_v17, %v82_v20 }
  0x33   :  { %v89_v24 = vadd.f32 %v87_v22, %v83_v19 }
  0x34   :  { %v90_v25 = vadd.f32 %v88_v23, %v84_v21 }
  0x35   :  { %v91_v26 = vsub.f32 0.0, %v89_v24 }
  0x36   :  { %v92_v27 = vsub.f32 0.0, %v90_v25 }
  0x37   :  { %v93_v28 = vsub.f32 0.0, %v91_v26 }
  0x38   :  { %v94_v29 = vsub.f32 0.0, %v92_v27 }
  0x39   :  { %v95_v30 = vmul.f32 1.442695, %v93_v28 }
  0x3a   :  { %v97_v31 = vmul.f32 1.442695, %v94_v29 }
  0x3b   :  { %149 = vpow2.f32 %v95_v30 }
  0x3c   :  { %151 = vpow2.f32 %v97_v31 }
  0x48   :  { %v150_v32 = vpop.eup %149 }
  0x49   :  { %v152_v33 = vpop.eup %151  ;;  %v99_v34 = vsub.f32 1.0, %v150_v32 }
  0x4a   :  { %v100_v35 = vsub.f32 1.0, %v152_v33 }
  0x4b   :  { %v101_v36 = vmax.f32 %v99_v34, 0.0 }
  0x4c   :  { %v102_v37 = vmax.f32 %v100_v35, 0.0 }
  0x4d   :  { %v103_v38 = vmul.f32 %v101_v36, %v101_v36 }
  0x4e   :  { %v104_v39 = vmul.f32 %v102_v37, %v102_v37 }
  0x4f   :  { %v105_v40 = vmul.f32 %v103_v38, %v91_v26 }
  0x50   :  { %v106_v41 = vmul.f32 %v104_v39, %v92_v27 }
  0x52   :  { %v108_v42 = vadd.f32 %v106_v41, %v105_v40 }
  0x54   :  { %115 = vst [vmem:[#allocation8] sm:$0xff] %v108_v42 }
  0x55   :  { %204 = shalt.err (!%p201_p0)
}
  0x56   :  { %125 = dma.vmem_to_hbm [thread:$0]  %s123_s1, 128, %s250_s2, [#allocation5]  }
  0x57   :  { %217 = dma.done.wait [#allocation5], 128  }
  0x58   :  { %218 = vsyncadd [#allocation5], 4294967168 }
  0x59   :  { %129 = vsyncpa [#allocation4], 1 }
  0x5a   :  { %130 = vsyncpa [#allocation7], 1 }
  0x5b   :  { %131 = vsyncpa [#allocation5], 1 }

</bundles_post_ra>
